<compile_context>
chip_gen: v5e
topology: v5e:2x2
jax: 0.10.0
libtpu: 0.0.40
codegen_flags: <defaults>
</compile_context>

<pallas_src>
import jax
import jax.numpy as jnp
from jax.experimental import pallas as pl
from jax.experimental.pallas import tpu as pltpu


def _round_up(x, m):
    return (x + m - 1) // m * m


def _conv_bn_relu_kernel(x_ref, w_ref, b_ref, o_ref, acc_ref):
    """Grid = (M tiles, Cout tiles, K tiles); axis 2 (K) is the reduction.

    x_ref : (TM, TK)  im2col patch tile      (compute dtype)
    w_ref : (TK, TC)  BN-folded weight tile  (compute dtype)
    b_ref : (1,  TC)  folded BN bias         (f32)
    o_ref : (TM, TC)  output tile            (out dtype)
    acc_ref: (TM, TC) f32 accumulator scratch (resident across K steps)
    """
    k = pl.program_id(2)

    @pl.when(k == 0)
    def _init():
        acc_ref[...] = jnp.zeros_like(acc_ref)

    acc_ref[...] += jnp.dot(x_ref[...], w_ref[...],
                            preferred_element_type=jnp.float32)

    @pl.when(k == pl.num_programs(2) - 1)
    def _epilogue():
        o_ref[...] = jnp.maximum(acc_ref[...] + b_ref[...], 0.0).astype(o_ref.dtype)


def basic_conv2d(x_nchw, weight, gamma, beta, running_mean, running_var,
                 *, stride=1, padding=0, dilation=1, eps=1e-5,
                 compute_dtype=jnp.bfloat16, out_dtype=None,
                 tile_m=512, tile_k=512, nchw_output=True):
    """Forward pass of BasicConv2d (conv no-bias -> inference BN -> ReLU).

    x_nchw: (N, Cin, H, W) float32
    weight: (Cout, Cin, KH, KW) float32 (PyTorch conv weight layout)
    returns (N, Cout, Ho, Wo) in out_dtype (NHWC if nchw_output=False).
    """
    if out_dtype is None:
        out_dtype = compute_dtype

    N, Cin, H, W = x_nchw.shape
    Cout, _, KH, KW = weight.shape
    Ho = (H + 2 * padding - dilation * (KH - 1) - 1) // stride + 1
    Wo = (W + 2 * padding - dilation * (KW - 1) - 1) // stride + 1
    K = Cin * KH * KW
    M = N * Ho * Wo

    # ---- Fold inference BatchNorm into the conv weight (scale) + a bias. ----
    scale = gamma / jnp.sqrt(running_var + eps)                     # (Cout,)
    bias = beta - running_mean * scale                              # (Cout,)
    w_folded = weight.astype(jnp.float32) * scale[:, None, None, None]

    # ---- im2col in the wrapper, directly in the compute dtype. -------------
    if KH == 1 and KW == 1 and stride == 1 and padding == 0 and dilation == 1:
        # 1x1 fast path: pure layout change, no dilated-patches op.
        patches = jnp.transpose(x_nchw.astype(compute_dtype),
                                (0, 2, 3, 1)).reshape(M, K)
    else:
        # Patch feature ordering is channel-major: k = c*KH*KW + kh*KW + kw.
        patches = jax.lax.conv_general_dilated_patches(
            x_nchw.astype(compute_dtype),
            filter_shape=(KH, KW),
            window_strides=(stride, stride),
            padding=[(padding, padding), (padding, padding)],
            rhs_dilation=(dilation, dilation),
            dimension_numbers=("NCHW", "OIHW", "NHWC")).reshape(M, K)

    # Weight as a (K, Cout) matrix with the same (Cin, KH, KW) feature order.
    w_mat = jnp.transpose(w_folded, (1, 2, 3, 0)).reshape(K, Cout)

    # ---- Tile selection + K/Cout padding (M is NOT padded; cdiv grid). -----
    TM = max(8, min(_round_up(tile_m, 8), _round_up(M, 8)))
    TK = min(_round_up(tile_k, 128), _round_up(K, 128))
    K_pad = _round_up(K, TK)
    C128 = _round_up(Cout, 128)
    TC = 128 if C128 <= 128 else 256          # 256-wide Cout tiles for wide layers
    C_pad = _round_up(Cout, TC)

    # patches already in compute dtype -> K padding is a single (fusable) pass.
    if K_pad > K:
        patches = jnp.pad(patches, ((0, 0), (0, K_pad - K)))
    w_p = jnp.pad(w_mat, ((0, K_pad - K), (0, C_pad - Cout))).astype(compute_dtype)
    bias_p = jnp.pad(bias, (0, C_pad - Cout)).reshape(1, C_pad).astype(jnp.float32)

    # ---- VMEM budget (explicit, v7x-safe: 64 MiB/TC physical). -------------
    in_b = jnp.dtype(compute_dtype).itemsize
    ob = jnp.dtype(out_dtype).itemsize
    need = (2 * TM * TK * in_b        # patches tile, double-buffered
            + 2 * TK * TC * in_b      # weight tile, double-buffered
            + 2 * TC * 4              # bias
            + 2 * TM * TC * ob        # output tile, double-buffered
            + TM * TC * 4)            # f32 accumulator scratch
    vmem_limit = int(min(max(2 * need + (2 << 20), 32 << 20), 48 << 20))

    grid = (pl.cdiv(M, TM), C_pad // TC, K_pad // TK)

    out = pl.pallas_call(
        _conv_bn_relu_kernel,
        out_shape=jax.ShapeDtypeStruct((M, C_pad), out_dtype),
        grid_spec=pltpu.PrefetchScalarGridSpec(
            num_scalar_prefetch=0,
            grid=grid,
            in_specs=[
                pl.BlockSpec((TM, TK), lambda i, j, k: (i, k)),
                pl.BlockSpec((TK, TC), lambda i, j, k: (k, j)),
                pl.BlockSpec((1, TC), lambda i, j, k: (0, j)),
            ],
            out_specs=pl.BlockSpec((TM, TC), lambda i, j, k: (i, j)),
            scratch_shapes=[pltpu.VMEM((TM, TC), jnp.float32)],
        ),
        compiler_params=pltpu.CompilerParams(
            dimension_semantics=("parallel", "parallel", "arbitrary"),
            vmem_limit_bytes=vmem_limit),
    )(patches, w_p, bias_p)

    out = out[:, :Cout].reshape(N, Ho, Wo, Cout)
    if not nchw_output:
        return out
    # NHWC -> NCHW only to honor the PyTorch convention; in a real model keep
    # NHWC end-to-end (nchw_output=False) to avoid this extra mem-bound pass.
    return jnp.transpose(out, (0, 3, 1, 2))


def _reference(x, weight, gamma, beta, running_mean, running_var,
               stride, padding, dilation, eps=1e-5):
    ref = jax.lax.conv_general_dilated(
        x, weight, window_strides=(stride, stride),
        padding=[(padding, padding), (padding, padding)],
        rhs_dilation=(dilation, dilation),
        dimension_numbers=("NCHW", "OIHW", "NCHW"))
    s = gamma / jnp.sqrt(running_var + eps)
    b = beta - running_mean * s
    return jnp.maximum(ref * s[None, :, None, None] + b[None, :, None, None], 0.0)


def _make_params(key, cin, cout, k):
    kw, kg, kb, km, kv = jax.random.split(key, 5)
    fan_in = cin * k * k
    weight = jax.random.normal(kw, (cout, cin, k, k),
                               dtype=jnp.float32) * (2.0 / fan_in) ** 0.5
    gamma = 1.0 + 0.1 * jax.random.normal(kg, (cout,), dtype=jnp.float32)
    beta = 0.1 * jax.random.normal(kb, (cout,), dtype=jnp.float32)
    rmean = 0.1 * jax.random.normal(km, (cout,), dtype=jnp.float32)
    rvar = jnp.abs(1.0 + 0.1 * jax.random.normal(kv, (cout,), dtype=jnp.float32))
    return weight, gamma, beta, rmean, rvar


if __name__ == "__main__":
    key = jax.random.PRNGKey(0)
    kx, kp1, kp2 = jax.random.split(key, 3)

    # Small shapes consistent with BasicConv2d usage.
    N, Cin, H, W = 2, 4, 16, 16
    x = jax.random.normal(kx, (N, Cin, H, W), dtype=jnp.float32)

    # --- Case 1: 3x3, stride 1, padding 1 (general im2col path). ---
    Cout, ks, st, pd, dl = 8, 3, 1, 1, 1
    weight, gamma, beta, rmean, rvar = _make_params(kp1, Cin, Cout, ks)
    ref = _reference(x, weight, gamma, beta, rmean, rvar, st, pd, dl)

    # f32 compute + f32 output: tight semantic check.
    out_f32 = basic_conv2d(x, weight, gamma, beta, rmean, rvar,
                           stride=st, padding=pd, dilation=dl,
                           compute_dtype=jnp.float32, out_dtype=jnp.float32)
    out_f32 = jax.block_until_ready(out_f32)
    assert out_f32.shape == (N, Cout, H, W)
    assert jnp.allclose(out_f32, ref, atol=1e-4, rtol=1e-4)

    # bf16 compute + bf16 output (production path): operand-quant error only.
    out_bf16 = basic_conv2d(x, weight, gamma, beta, rmean, rvar,
                            stride=st, padding=pd, dilation=dl,
                            compute_dtype=jnp.bfloat16)
    out_bf16 = jax.block_until_ready(out_bf16)
    assert out_bf16.shape == (N, Cout, H, W)
    assert jnp.allclose(out_bf16.astype(jnp.float32), ref, atol=5e-2, rtol=5e-2)

    # --- Case 2: 1x1 conv fast path. ---
    Cout2, ks2 = 16, 1
    weight2, gamma2, beta2, rmean2, rvar2 = _make_params(kp2, Cin, Cout2, ks2)
    ref2 = _reference(x, weight2, gamma2, beta2, rmean2, rvar2, 1, 0, 1)
    out2 = basic_conv2d(x, weight2, gamma2, beta2, rmean2, rvar2,
                        stride=1, padding=0, dilation=1,
                        compute_dtype=jnp.float32, out_dtype=jnp.float32)
    out2 = jax.block_until_ready(out2)
    assert out2.shape == (N, Cout2, H, W)
    assert jnp.allclose(out2, ref2, atol=1e-4, rtol=1e-4)

    print("KERNEL_OK")
</pallas_src>

<mosaic_0001>
module attributes {stable_mosaic.version = 11 : i64} {
  func.func @_conv_bn_relu_kernel(%arg0: i32, %arg1: i32, %arg2: i32, %arg3: memref<512x128xf32, #tpu.memory_space<vmem>>, %arg4: memref<128x128xf32, #tpu.memory_space<vmem>>, %arg5: memref<1x128xf32, #tpu.memory_space<vmem>>, %arg6: memref<512x128xf32, #tpu.memory_space<vmem>>, %arg7: memref<512x128xf32, #tpu.memory_space<vmem>>) attributes {dimension_semantics = [#tpu.dimension_semantics<parallel>, #tpu.dimension_semantics<parallel>, #tpu.dimension_semantics<arbitrary>], iteration_bounds = array<i64: 1, 1, 1>, scalar_prefetch = 0 : i64, scratch_operands = 1 : i64, tpu.core_type = #tpu.core_type<tc>, window_params = [{transform_indices = @transform_0, window_bounds = array<i64: 512, 128>}, {transform_indices = @transform_1, window_bounds = array<i64: 128, 128>}, {transform_indices = @transform_2, window_bounds = array<i64: 1, 128>}, {transform_indices = @transform_3, window_bounds = array<i64: 512, 128>}]} {
    %c0_i32 = arith.constant 0 : i32
    %0 = arith.cmpi eq, %arg2, %c0_i32 : i32
    %1 = arith.extui %0 : i1 to i32
    %c0_i32_0 = arith.constant 0 : i32
    %2 = arith.cmpi ne, %1, %c0_i32_0 : i32
    scf.if %2 {
      %cst_10 = arith.constant 0.000000e+00 : f32
      %12 = vector.broadcast %cst_10 : f32 to vector<512x128xf32>
      %c0_11 = arith.constant 0 : index
      %c0_12 = arith.constant 0 : index
      %13 = vector.load %arg7[%c0_11, %c0_12] : memref<512x128xf32, #tpu.memory_space<vmem>>, vector<512x128xf32>
      tpu.vector_store %arg7[%c0_11, %c0_12], %12 {strides = array<i32>} : memref<512x128xf32, #tpu.memory_space<vmem>>, vector<512x128xf32>,
    } else {
    }
    %c0 = arith.constant 0 : index
    %c0_1 = arith.constant 0 : index
    %3 = vector.load %arg7[%c0, %c0_1] : memref<512x128xf32, #tpu.memory_space<vmem>>, vector<512x128xf32>
    %c0_2 = arith.constant 0 : index
    %c0_3 = arith.constant 0 : index
    %4 = vector.load %arg3[%c0_2, %c0_3] : memref<512x128xf32, #tpu.memory_space<vmem>>, vector<512x128xf32>
    %c0_4 = arith.constant 0 : index
    %c0_5 = arith.constant 0 : index
    %5 = vector.load %arg4[%c0_4, %c0_5] : memref<128x128xf32, #tpu.memory_space<vmem>>, vector<128x128xf32>
    %cst = arith.constant dense<0.000000e+00> : vector<512x128xf32>
    %6 = tpu.matmul %4, %5, %cst {dimension_numbers = #tpu.dot_dimension_numbers<[1], [0], [0], [1], [0, 0, 1, 1], [], []>} : vector<512x128xf32>, vector<128x128xf32>, vector<512x128xf32> -> vector<512x128xf32>
    %7 = arith.addf %3, %6 : vector<512x128xf32>
    %c0_6 = arith.constant 0 : index
    %c0_7 = arith.constant 0 : index
    %8 = vector.load %arg7[%c0_6, %c0_7] : memref<512x128xf32, #tpu.memory_space<vmem>>, vector<512x128xf32>
    tpu.vector_store %arg7[%c0_6, %c0_7], %7 {strides = array<i32>} : memref<512x128xf32, #tpu.memory_space<vmem>>, vector<512x128xf32>,
    %c0_i32_8 = arith.constant 0 : i32
    %9 = arith.cmpi eq, %arg2, %c0_i32_8 : i32
    %10 = arith.extui %9 : i1 to i32
    %c0_i32_9 = arith.constant 0 : i32
    %11 = arith.cmpi ne, %10, %c0_i32_9 : i32
    scf.if %11 {
      %c0_10 = arith.constant 0 : index
      %c0_11 = arith.constant 0 : index
      %12 = vector.load %arg7[%c0_10, %c0_11] : memref<512x128xf32, #tpu.memory_space<vmem>>, vector<512x128xf32>
      %c0_12 = arith.constant 0 : index
      %c0_13 = arith.constant 0 : index
      %13 = vector.load %arg5[%c0_12, %c0_13] : memref<1x128xf32, #tpu.memory_space<vmem>>, vector<1x128xf32>
      %14 = vector.broadcast %13 : vector<1x128xf32> to vector<512x128xf32>
      %15 = arith.addf %12, %14 : vector<512x128xf32>
      %cst_14 = arith.constant 0.000000e+00 : f32
      %16 = vector.broadcast %cst_14 : f32 to vector<512x128xf32>
      %17 = arith.maximumf %15, %16 : vector<512x128xf32>
      %c0_15 = arith.constant 0 : index
      %c0_16 = arith.constant 0 : index
      %18 = vector.load %arg6[%c0_15, %c0_16] : memref<512x128xf32, #tpu.memory_space<vmem>>, vector<512x128xf32>
      tpu.vector_store %arg6[%c0_15, %c0_16], %17 {strides = array<i32>} : memref<512x128xf32, #tpu.memory_space<vmem>>, vector<512x128xf32>,
    } else {
    }
    return
  }
  func.func @transform_0(%arg0: i32, %arg1: i32, %arg2: i32) -> (i32, i32) {
    %c0_i32 = arith.constant 0 : i32
    return %arg0, %arg2 : i32, i32
  }
  func.func @transform_1(%arg0: i32, %arg1: i32, %arg2: i32) -> (i32, i32) {
    %c0_i32 = arith.constant 0 : i32
    return %arg2, %arg1 : i32, i32
  }
  func.func @transform_2(%arg0: i32, %arg1: i32, %arg2: i32) -> (i32, i32) {
    %c0_i32 = arith.constant 0 : i32
    %c0_i32_0 = arith.constant 0 : i32
    return %c0_i32, %arg1 : i32, i32
  }
  func.func @transform_3(%arg0: i32, %arg1: i32, %arg2: i32) -> (i32, i32) {
    %c0_i32 = arith.constant 0 : i32
    return %arg0, %arg1 : i32, i32
  }
}

</mosaic_0001>

<bundles_post_ra>
// kernel: tpu_custom_call.1
= control target key start
LH: loop header
LB: loop body
LE: loop exit
PB: predicated region body
PF: predicated region fallthrough
CT: control target
= control target key end

     0   :  { %8 = vsyncpa [#allocation4], 0  ;;  %s1123_s0 = inlined_call_operand.hbm [shape: f32[512,128], index: 0, kind: input, shape index: {}]   ;;  %s1124_s1 = inlined_call_operand.hbm [shape: f32[128,128], index: 1, kind: input, shape index: {}]   ;;  %s1125_s2 = inlined_call_operand.vmem [shape: f32[1,128], index: 2, kind: input, shape index: {}]   ;;  %s1126_s3 = inlined_call_operand.hbm [shape: f32[512,128], index: 3, kind: output, shape index: {}]  }
   0x1   :  { %9 = vsyncpa [#allocation7], 0 }
   0x2   :  { %10 = vsyncpa [#allocation5], 0  ;;  %s15_s14 = sshll.u32 %s1123_s0, 4  ;;  %s1011_s15 = smov [#allocation3]   ;;  %s16_s14 = int_to_ptr.hbm [resolvable:$true] %s15_s14 }
   0x3   :  { %s17_s16 = sshll.u32 %s1011_s15, 4  ;;  %s28_s19 = sshll.u32 %s1124_s1, 4  ;;  %s18_s16 = int_to_ptr.vmem [resolvable:$true] %s17_s16  ;;  %s29_s19 = int_to_ptr.hbm [resolvable:$true] %s28_s19 }
   0x4   :  { %s1012_s20 = smov 128   ;;  %s1013_s21 = smov 8  }
   0x5   :  { %23 = dma.hbm_to_vmem [thread:$0]  %s16_s14, 8192, %s18_s16, [#allocation4], %s1012_s20, %s1012_s20, %s1013_s21  }
   0x6   :  { %s1014_s22 = smov [#allocation6]  }
   0x7   :  { %s30_s23 = sshll.u32 %s1014_s22, 4  ;;  %s31_s23 = int_to_ptr.vmem [resolvable:$true] %s30_s23 }
   0x8   :  { %36 = dma.hbm_to_vmem [thread:$0]  %s29_s19, 2048, %s31_s23, [#allocation7], %s1012_s20, %s1012_s20, %s1013_s21  }
   0x9   :  { %1005 = dma.done.wait [#allocation4], 8192  }
   0xa   :  { %1006 = vsyncadd [#allocation4], 4294959104 }
   0xb   :  { %1007 = dma.done.wait [#allocation7], 2048  }
   0xc   :  { %1008 = vsyncadd [#allocation7], 4294965248  ;;  %v258_v0 = vld [vmem:[#allocation6 + $0x78] sm:$0xff]  ;;  %v257_v1 = vld [vmem:[#allocation6 + $0x70] sm:$0xff]  ;;  %s865_s27 = sshll.u32 %s1126_s3, 4  ;;  %s866_s27 = int_to_ptr.hbm [resolvable:$true] %s865_s27 }
   0xd   :  { %880 = vmatpush.msra.mxu2 %v258_v0  ;;  %881 = vmatpush.msra.mxu3 %v258_v0  ;;  %v256_v2 = vld [vmem:[#allocation6 + $0x68] sm:$0xff]  ;;  %v255_v3 = vld [vmem:[#allocation6 + $0x60] sm:$0xff]  ;;  %v254_v4 = vld [vmem:[#allocation6 + $0x58] sm:$0xff] }
   0xe   :  { %259 = vmatpush.msra.mxu0 %v258_v0  ;;  %879 = vmatpush.msra.mxu1 %v258_v0  ;;  %v253_v5 = vld [vmem:[#allocation6 + $0x50] sm:$0xff]  ;;  %v252_v6 = vld [vmem:[#allocation6 + $0x48] sm:$0xff]  ;;  %v251_v7 = vld [vmem:[#allocation6 + $0x40] sm:$0xff] }
   0xf   :  { %883 = vmatpush.msra.mxu2 %v257_v1  ;;  %884 = vmatpush.msra.mxu3 %v257_v1  ;;  %v250_v8 = vld [vmem:[#allocation6 + $0x38] sm:$0xff]  ;;  %v249_v9 = vld [vmem:[#allocation6 + $0x30] sm:$0xff]  ;;  %v248_v10 = vld [vmem:[#allocation6 + $0x28] sm:$0xff] }
  0x10   :  { %260 = vmatpush.msra.mxu0 %v257_v1  ;;  %882 = vmatpush.msra.mxu1 %v257_v1  ;;  %v247_v11 = vld [vmem:[#allocation6 + $0x20] sm:$0xff]  ;;  %v246_v12 = vld [vmem:[#allocation6 + $0x18] sm:$0xff]  ;;  %v245_v13 = vld [vmem:[#allocation6 + $0x10] sm:$0xff] }
  0x11   :  { %886 = vmatpush.msra.mxu2 %v256_v2  ;;  %887 = vmatpush.msra.mxu3 %v256_v2  ;;  %v244_v14 = vld [vmem:[#allocation6 + $0x8] sm:$0xff]  ;;  %v243_v15 = vld [vmem:[#allocation6] sm:$0xff]  ;;  %v213_v24 = vld [vmem:[#allocation3 + $0x110] sm:$0xff] }
  0x12   :  { %261 = vmatpush.msra.mxu0 %v256_v2  ;;  %885 = vmatpush.msra.mxu1 %v256_v2  ;;  %v211_v16 = vld [vmem:[#allocation3 + $0x100] sm:$0xff]  ;;  %v212_v20 = vld [vmem:[#allocation3 + $0x108] sm:$0xff]  ;;  %v229_v25 = vld [vmem:[#allocation3 + $0x190] sm:$0xff] }
  0x13   :  { %889 = vmatpush.msra.mxu2 %v255_v3  ;;  %890 = vmatpush.msra.mxu3 %v255_v3  ;;  %v227_v17 = vld [vmem:[#allocation3 + $0x180] sm:$0xff]  ;;  %v228_v21 = vld [vmem:[#allocation3 + $0x188] sm:$0xff]  ;;  %v181_v26 = vld [vmem:[#allocation3 + $0x10] sm:$0xff] }
  0x14   :  { %262 = vmatpush.msra.mxu0 %v255_v3  ;;  %888 = vmatpush.msra.mxu1 %v255_v3  ;;  %v179_v18 = vld [vmem:[#allocation3] sm:$0xff]  ;;  %v180_v22 = vld [vmem:[#allocation3 + $0x8] sm:$0xff]  ;;  %v197_v27 = vld [vmem:[#allocation3 + $0x90] sm:$0xff] }
  0x15   :  { %892 = vmatpush.msra.mxu2 %v254_v4  ;;  %893 = vmatpush.msra.mxu3 %v254_v4  ;;  %v195_v19 = vld [vmem:[#allocation3 + $0x80] sm:$0xff]  ;;  %v196_v23 = vld [vmem:[#allocation3 + $0x88] sm:$0xff]  ;;  %v214_v28 = vld [vmem:[#allocation3 + $0x118] sm:$0xff] }
  0x16   :  { %263 = vmatpush.msra.mxu0 %v254_v4  ;;  %891 = vmatpush.msra.mxu1 %v254_v4  ;;  %v230_v29 = vld [vmem:[#allocation3 + $0x198] sm:$0xff]  ;;  %v215_v32 = vld [vmem:[#allocation3 + $0x120] sm:$0xff]  ;;  %v216_v36 = vld [vmem:[#allocation3 + $0x128] sm:$0xff] }
  0x17   :  { %895 = vmatpush.msra.mxu2 %v253_v5  ;;  %896 = vmatpush.msra.mxu3 %v253_v5  ;;  %v182_v30 = vld [vmem:[#allocation3 + $0x18] sm:$0xff]  ;;  %v231_v33 = vld [vmem:[#allocation3 + $0x1a0] sm:$0xff]  ;;  %v232_v37 = vld [vmem:[#allocation3 + $0x1a8] sm:$0xff] }
  0x18   :  { %264 = vmatpush.msra.mxu0 %v253_v5  ;;  %894 = vmatpush.msra.mxu1 %v253_v5  ;;  %v198_v31 = vld [vmem:[#allocation3 + $0x98] sm:$0xff]  ;;  %v183_v34 = vld [vmem:[#allocation3 + $0x20] sm:$0xff]  ;;  %v184_v38 = vld [vmem:[#allocation3 + $0x28] sm:$0xff] }
  0x19   :  { %898 = vmatpush.msra.mxu2 %v252_v6  ;;  %899 = vmatpush.msra.mxu3 %v252_v6  ;;  %v199_v35 = vld [vmem:[#allocation3 + $0xa0] sm:$0xff]  ;;  %v200_v39 = vld [vmem:[#allocation3 + $0xa8] sm:$0xff]  ;;  %v217_v40 = vld [vmem:[#allocation3 + $0x130] sm:$0xff] }
  0x1a   :  { %265 = vmatpush.msra.mxu0 %v252_v6  ;;  %897 = vmatpush.msra.mxu1 %v252_v6  ;;  %v233_v41 = vld [vmem:[#allocation3 + $0x1b0] sm:$0xff]  ;;  %v218_v44 = vld [vmem:[#allocation3 + $0x138] sm:$0xff]  ;;  %v219_v48 = vld [vmem:[#allocation3 + $0x140] sm:$0xff] }
  0x1b   :  { %901 = vmatpush.msra.mxu2 %v251_v7  ;;  %902 = vmatpush.msra.mxu3 %v251_v7  ;;  %v185_v42 = vld [vmem:[#allocation3 + $0x30] sm:$0xff]  ;;  %v234_v45 = vld [vmem:[#allocation3 + $0x1b8] sm:$0xff]  ;;  %v235_v49 = vld [vmem:[#allocation3 + $0x1c0] sm:$0xff] }
  0x1c   :  { %266 = vmatpush.msra.mxu0 %v251_v7  ;;  %900 = vmatpush.msra.mxu1 %v251_v7  ;;  %v201_v43 = vld [vmem:[#allocation3 + $0xb0] sm:$0xff]  ;;  %v186_v46 = vld [vmem:[#allocation3 + $0x38] sm:$0xff]  ;;  %v187_v50 = vld [vmem:[#allocation3 + $0x40] sm:$0xff] }
  0x1d   :  { %904 = vmatpush.msra.mxu2 %v250_v8  ;;  %905 = vmatpush.msra.mxu3 %v250_v8  ;;  %v202_v47 = vld [vmem:[#allocation3 + $0xb8] sm:$0xff]  ;;  %v203_v51 = vld [vmem:[#allocation3 + $0xc0] sm:$0xff]  ;;  %v220_v52 = vld [vmem:[#allocation3 + $0x148] sm:$0xff] }
  0x1e   :  { %267 = vmatpush.msra.mxu0 %v250_v8  ;;  %903 = vmatpush.msra.mxu1 %v250_v8  ;;  %v236_v53 = vld [vmem:[#allocation3 + $0x1c8] sm:$0xff]  ;;  %v221_v56 = vld [vmem:[#allocation3 + $0x150] sm:$0xff]  ;;  %v222_v60 = vld [vmem:[#allocation3 + $0x158] sm:$0xff] }
  0x1f   :  { %907 = vmatpush.msra.mxu2 %v249_v9  ;;  %908 = vmatpush.msra.mxu3 %v249_v9  ;;  %v188_v54 = vld [vmem:[#allocation3 + $0x48] sm:$0xff]  ;;  %v237_v57 = vld [vmem:[#allocation3 + $0x1d0] sm:$0xff]  ;;  %v238_v61 = vld [vmem:[#allocation3 + $0x1d8] sm:$0xff] }
  0x20   :  { %268 = vmatpush.msra.mxu0 %v249_v9  ;;  %906 = vmatpush.msra.mxu1 %v249_v9  ;;  %v204_v55 = vld [vmem:[#allocation3 + $0xc8] sm:$0xff]  ;;  %v189_v58 = vld [vmem:[#allocation3 + $0x50] sm:$0xff]  ;;  %v190_v62 = vld [vmem:[#allocation3 + $0x58] sm:$0xff] }
  0x21   :  { %910 = vmatpush.msra.mxu2 %v248_v10  ;;  %911 = vmatpush.msra.mxu3 %v248_v10  ;;  %v205_v59 = vld [vmem:[#allocation3 + $0xd0] sm:$0xff]  ;;  %v206_v63 = vld [vmem:[#allocation3 + $0xd8] sm:$0xff]  ;;  %v223_v0 = vld [vmem:[#allocation3 + $0x160] sm:$0xff] }
  0x22   :  { %269 = vmatpush.msra.mxu0 %v248_v10  ;;  %909 = vmatpush.msra.mxu1 %v248_v10  ;;  %v239_v1 = vld [vmem:[#allocation3 + $0x1e0] sm:$0xff]  ;;  %v224_v4 = vld [vmem:[#allocation3 + $0x168] sm:$0xff]  ;;  %v225_v8 = vld [vmem:[#allocation3 + $0x170] sm:$0xff] }
  0x23   :  { %913 = vmatpush.msra.mxu2 %v247_v11  ;;  %914 = vmatpush.msra.mxu3 %v247_v11  ;;  %v191_v2 = vld [vmem:[#allocation3 + $0x60] sm:$0xff]  ;;  %v240_v5 = vld [vmem:[#allocation3 + $0x1e8] sm:$0xff]  ;;  %v241_v9 = vld [vmem:[#allocation3 + $0x1f0] sm:$0xff] }
  0x24   :  { %270 = vmatpush.msra.mxu0 %v247_v11  ;;  %912 = vmatpush.msra.mxu1 %v247_v11  ;;  %v207_v3 = vld [vmem:[#allocation3 + $0xe0] sm:$0xff]  ;;  %v192_v6 = vld [vmem:[#allocation3 + $0x68] sm:$0xff]  ;;  %v193_v10 = vld [vmem:[#allocation3 + $0x70] sm:$0xff] }
  0x25   :  { %916 = vmatpush.msra.mxu2 %v246_v12  ;;  %917 = vmatpush.msra.mxu3 %v246_v12  ;;  %v208_v7 = vld [vmem:[#allocation3 + $0xe8] sm:$0xff]  ;;  %v209_v11 = vld [vmem:[#allocation3 + $0xf0] sm:$0xff] }
  0x26   :  { %271 = vmatpush.msra.mxu0 %v246_v12  ;;  %915 = vmatpush.msra.mxu1 %v246_v12  ;;  %v226_v12 = vld [vmem:[#allocation3 + $0x178] sm:$0xff] }
  0x27   :  { %919 = vmatpush.msra.mxu2 %v245_v13  ;;  %920 = vmatpush.msra.mxu3 %v245_v13 }
  0x28   :  { %272 = vmatpush.msra.mxu0 %v245_v13  ;;  %918 = vmatpush.msra.mxu1 %v245_v13  ;;  %v242_v13 = vld [vmem:[#allocation3 + $0x1f8] sm:$0xff] }
  0x29   :  { %922 = vmatpush.msra.mxu2 %v244_v14  ;;  %923 = vmatpush.msra.mxu3 %v244_v14 }
  0x2a   :  { %273 = vmatpush.msra.mxu0 %v244_v14  ;;  %921 = vmatpush.msra.mxu1 %v244_v14  ;;  %v194_v14 = vld [vmem:[#allocation3 + $0x78] sm:$0xff] }
  0x2b   :  { %925 = vmatpush.msra.mxu2 %v243_v15  ;;  %926 = vmatpush.msra.mxu3 %v243_v15 }
  0x2c   :  { %371 = vmatmul.f32.vlgmr.msra.gmra.mxu2 %v211_v16  ;;  %419 = vmatmul.f32.vlgmr.msra.gmra.mxu3 %v227_v17  ;;  %v1051_v16 = vld [vmem:[%s1125_s2] ss:$0 sm:$0xff]  ;;  %s1015_s2 = smov [#allocation8]  }
  0x2d   :  { %274 = vmatpush.msra.mxu0 %v243_v15  ;;  %924 = vmatpush.msra.mxu1 %v243_v15  ;;  %v210_v15 = vld [vmem:[#allocation3 + $0xf8] sm:$0xff]  ;;  %s863_s24 = sshll.u32 %s1015_s2, 4  ;;  %s864_s24 = int_to_ptr.vmem [resolvable:$true] %s863_s24 }
  0x2e   :  { %275 = vmatmul.f32.vlgmr.msra.gmra.mxu0 %v179_v18  ;;  %323 = vmatmul.f32.vlgmr.msra.gmra.mxu1 %v195_v19 }
  0x34   :  { %374 = vmatmul.f32.gmra.mxu2 %v212_v20  ;;  %422 = vmatmul.f32.gmra.mxu3 %v228_v21 }
  0x36   :  { %278 = vmatmul.f32.gmra.mxu0 %v180_v22  ;;  %326 = vmatmul.f32.gmra.mxu1 %v196_v23 }
  0x3c   :  { %377 = vmatmul.f32.gmra.mxu2 %v213_v24  ;;  %425 = vmatmul.f32.gmra.mxu3 %v229_v25 }
  0x3e   :  { %281 = vmatmul.f32.gmra.mxu0 %v181_v26  ;;  %329 = vmatmul.f32.gmra.mxu1 %v197_v27 }
  0x44   :  { %380 = vmatmul.f32.gmra.mxu2 %v214_v28  ;;  %428 = vmatmul.f32.gmra.mxu3 %v230_v29 }
  0x46   :  { %284 = vmatmul.f32.gmra.mxu0 %v182_v30  ;;  %332 = vmatmul.f32.gmra.mxu1 %v198_v31 }
  0x4c   :  { %383 = vmatmul.f32.gmra.mxu2 %v215_v32  ;;  %431 = vmatmul.f32.gmra.mxu3 %v231_v33 }
  0x4e   :  { %287 = vmatmul.f32.gmra.mxu0 %v183_v34  ;;  %335 = vmatmul.f32.gmra.mxu1 %v199_v35 }
  0x54   :  { %386 = vmatmul.f32.gmra.mxu2 %v216_v36  ;;  %434 = vmatmul.f32.gmra.mxu3 %v232_v37 }
  0x56   :  { %290 = vmatmul.f32.gmra.mxu0 %v184_v38  ;;  %338 = vmatmul.f32.gmra.mxu1 %v200_v39 }
  0x5c   :  { %389 = vmatmul.f32.gmra.mxu2 %v217_v40  ;;  %437 = vmatmul.f32.gmra.mxu3 %v233_v41 }
  0x5e   :  { %293 = vmatmul.f32.gmra.mxu0 %v185_v42  ;;  %341 = vmatmul.f32.gmra.mxu1 %v201_v43 }
  0x64   :  { %392 = vmatmul.f32.gmra.mxu2 %v218_v44  ;;  %440 = vmatmul.f32.gmra.mxu3 %v234_v45 }
  0x66   :  { %296 = vmatmul.f32.gmra.mxu0 %v186_v46  ;;  %344 = vmatmul.f32.gmra.mxu1 %v202_v47 }
  0x6c   :  { %395 = vmatmul.f32.gmra.mxu2 %v219_v48  ;;  %443 = vmatmul.f32.gmra.mxu3 %v235_v49 }
  0x6e   :  { %299 = vmatmul.f32.gmra.mxu0 %v187_v50  ;;  %347 = vmatmul.f32.gmra.mxu1 %v203_v51 }
  0x74   :  { %398 = vmatmul.f32.gmra.mxu2 %v220_v52  ;;  %446 = vmatmul.f32.gmra.mxu3 %v236_v53 }
  0x76   :  { %302 = vmatmul.f32.gmra.mxu0 %v188_v54  ;;  %350 = vmatmul.f32.gmra.mxu1 %v204_v55 }
  0x7c   :  { %401 = vmatmul.f32.gmra.mxu2 %v221_v56  ;;  %449 = vmatmul.f32.gmra.mxu3 %v237_v57 }
  0x7e   :  { %305 = vmatmul.f32.gmra.mxu0 %v189_v58  ;;  %353 = vmatmul.f32.gmra.mxu1 %v205_v59 }
  0x84   :  { %404 = vmatmul.f32.gmra.mxu2 %v222_v60  ;;  %452 = vmatmul.f32.gmra.mxu3 %v238_v61 }
  0x86   :  { %308 = vmatmul.f32.gmra.mxu0 %v190_v62  ;;  %356 = vmatmul.f32.gmra.mxu1 %v206_v63 }
  0x8c   :  { %407 = vmatmul.f32.gmra.mxu2 %v223_v0  ;;  %455 = vmatmul.f32.gmra.mxu3 %v239_v1 }
  0x8e   :  { %311 = vmatmul.f32.gmra.mxu0 %v191_v2  ;;  %359 = vmatmul.f32.gmra.mxu1 %v207_v3 }
  0x94   :  { %410 = vmatmul.f32.gmra.mxu2 %v224_v4  ;;  %458 = vmatmul.f32.gmra.mxu3 %v240_v5 }
  0x96   :  { %314 = vmatmul.f32.gmra.mxu0 %v192_v6  ;;  %362 = vmatmul.f32.gmra.mxu1 %v208_v7 }
  0x9c   :  { %413 = vmatmul.f32.gmra.mxu2 %v225_v8  ;;  %461 = vmatmul.f32.gmra.mxu3 %v241_v9 }
  0x9e   :  { %317 = vmatmul.f32.gmra.mxu0 %v193_v10  ;;  %365 = vmatmul.f32.gmra.mxu1 %v209_v11 }
  0xa4   :  { %416 = vmatmul.f32.gmra.mxu2 %v226_v12  ;;  %464 = vmatmul.f32.gmra.mxu3 %v242_v13 }
  0xa6   :  { %320 = vmatmul.f32.gmra.mxu0 %v194_v14  ;;  %368 = vmatmul.f32.gmra.mxu1 %v210_v15 }
  0xab   :  { %v276_v17 = vpop.f32.mrf.mxu0  ;;  %v324_v18 = vpop.f32.mrf.mxu1 }
  0xac   :  { %v667_v19 = vadd.f32 %v1051_v16, %v276_v17  ;;  %v683_v20 = vadd.f32 %v1051_v16, %v324_v18 }
  0xae   :  { %v731_v21 = vmax.f32 %v667_v19, 0.0  ;;  %v747_v22 = vmax.f32 %v683_v20, 0.0 }
  0xaf   :  { %v372_v23 = vpop.f32.mrf.mxu2  ;;  %v420_v24 = vpop.f32.mrf.mxu3 }
  0xb0   :  { %795 = vst [vmem:[#allocation8] sm:$0xff] %v731_v21  ;;  %v699_v25 = vadd.f32 %v1051_v16, %v372_v23  ;;  %v715_v26 = vadd.f32 %v1051_v16, %v420_v24 }
  0xb1   :  { %811 = vst [vmem:[#allocation8 + $0x80] sm:$0xff] %v747_v22 }
  0xb2   :  { %v763_v27 = vmax.f32 %v699_v25, 0.0  ;;  %v779_v28 = vmax.f32 %v715_v26, 0.0 }
  0xb3   :  { %v279_v29 = vpop.f32.mrf.mxu0  ;;  %v327_v30 = vpop.f32.mrf.mxu1 }
  0xb4   :  { %827 = vst [vmem:[#allocation8 + $0x100] sm:$0xff] %v763_v27  ;;  %v668_v31 = vadd.f32 %v1051_v16, %v279_v29  ;;  %v684_v32 = vadd.f32 %v1051_v16, %v327_v30 }
  0xb5   :  { %843 = vst [vmem:[#allocation8 + $0x180] sm:$0xff] %v779_v28 }
  0xb6   :  { %v732_v33 = vmax.f32 %v668_v31, 0.0  ;;  %v748_v34 = vmax.f32 %v684_v32, 0.0 }
  0xb7   :  { %v375_v35 = vpop.f32.mrf.mxu2  ;;  %v423_v36 = vpop.f32.mrf.mxu3 }
  0xb8   :  { %796 = vst [vmem:[#allocation8 + $0x8] sm:$0xff] %v732_v33  ;;  %v700_v37 = vadd.f32 %v1051_v16, %v375_v35  ;;  %v716_v38 = vadd.f32 %v1051_v16, %v423_v36 }
  0xb9   :  { %812 = vst [vmem:[#allocation8 + $0x88] sm:$0xff] %v748_v34 }
  0xba   :  { %v764_v39 = vmax.f32 %v700_v37, 0.0  ;;  %v780_v40 = vmax.f32 %v716_v38, 0.0 }
  0xbb   :  { %v282_v41 = vpop.f32.mrf.mxu0  ;;  %v330_v42 = vpop.f32.mrf.mxu1 }
  0xbc   :  { %828 = vst [vmem:[#allocation8 + $0x108] sm:$0xff] %v764_v39  ;;  %v669_v43 = vadd.f32 %v1051_v16, %v282_v41  ;;  %v685_v44 = vadd.f32 %v1051_v16, %v330_v42 }
  0xbd   :  { %844 = vst [vmem:[#allocation8 + $0x188] sm:$0xff] %v780_v40 }
  0xbe   :  { %v733_v45 = vmax.f32 %v669_v43, 0.0  ;;  %v749_v46 = vmax.f32 %v685_v44, 0.0 }
  0xbf   :  { %v378_v47 = vpop.f32.mrf.mxu2  ;;  %v426_v48 = vpop.f32.mrf.mxu3 }
  0xc0   :  { %797 = vst [vmem:[#allocation8 + $0x10] sm:$0xff] %v733_v45  ;;  %v701_v49 = vadd.f32 %v1051_v16, %v378_v47  ;;  %v717_v50 = vadd.f32 %v1051_v16, %v426_v48 }
  0xc1   :  { %813 = vst [vmem:[#allocation8 + $0x90] sm:$0xff] %v749_v46 }
  0xc2   :  { %v765_v51 = vmax.f32 %v701_v49, 0.0  ;;  %v781_v52 = vmax.f32 %v717_v50, 0.0 }
  0xc3   :  { %v285_v53 = vpop.f32.mrf.mxu0  ;;  %v333_v54 = vpop.f32.mrf.mxu1 }
  0xc4   :  { %829 = vst [vmem:[#allocation8 + $0x110] sm:$0xff] %v765_v51  ;;  %v670_v55 = vadd.f32 %v1051_v16, %v285_v53  ;;  %v686_v56 = vadd.f32 %v1051_v16, %v333_v54 }
  0xc5   :  { %845 = vst [vmem:[#allocation8 + $0x190] sm:$0xff] %v781_v52 }
  0xc6   :  { %v734_v57 = vmax.f32 %v670_v55, 0.0  ;;  %v750_v58 = vmax.f32 %v686_v56, 0.0 }
  0xc7   :  { %v381_v59 = vpop.f32.mrf.mxu2  ;;  %v429_v60 = vpop.f32.mrf.mxu3 }
  0xc8   :  { %798 = vst [vmem:[#allocation8 + $0x18] sm:$0xff] %v734_v57  ;;  %v702_v61 = vadd.f32 %v1051_v16, %v381_v59  ;;  %v718_v62 = vadd.f32 %v1051_v16, %v429_v60 }
  0xc9   :  { %814 = vst [vmem:[#allocation8 + $0x98] sm:$0xff] %v750_v58 }
  0xca   :  { %v766_v63 = vmax.f32 %v702_v61, 0.0  ;;  %v782_v0 = vmax.f32 %v718_v62, 0.0 }
  0xcb   :  { %v288_v1 = vpop.f32.mrf.mxu0  ;;  %v336_v2 = vpop.f32.mrf.mxu1 }
  0xcc   :  { %830 = vst [vmem:[#allocation8 + $0x118] sm:$0xff] %v766_v63  ;;  %v671_v3 = vadd.f32 %v1051_v16, %v288_v1  ;;  %v687_v4 = vadd.f32 %v1051_v16, %v336_v2 }
  0xcd   :  { %846 = vst [vmem:[#allocation8 + $0x198] sm:$0xff] %v782_v0 }
  0xce   :  { %v735_v5 = vmax.f32 %v671_v3, 0.0  ;;  %v751_v6 = vmax.f32 %v687_v4, 0.0 }
  0xcf   :  { %v384_v7 = vpop.f32.mrf.mxu2  ;;  %v432_v8 = vpop.f32.mrf.mxu3 }
  0xd0   :  { %799 = vst [vmem:[#allocation8 + $0x20] sm:$0xff] %v735_v5  ;;  %v703_v9 = vadd.f32 %v1051_v16, %v384_v7  ;;  %v719_v10 = vadd.f32 %v1051_v16, %v432_v8 }
  0xd1   :  { %815 = vst [vmem:[#allocation8 + $0xa0] sm:$0xff] %v751_v6 }
  0xd2   :  { %v767_v11 = vmax.f32 %v703_v9, 0.0  ;;  %v783_v12 = vmax.f32 %v719_v10, 0.0 }
  0xd3   :  { %v291_v13 = vpop.f32.mrf.mxu0  ;;  %v339_v14 = vpop.f32.mrf.mxu1 }
  0xd4   :  { %831 = vst [vmem:[#allocation8 + $0x120] sm:$0xff] %v767_v11  ;;  %v672_v15 = vadd.f32 %v1051_v16, %v291_v13  ;;  %v688_v17 = vadd.f32 %v1051_v16, %v339_v14 }
  0xd5   :  { %847 = vst [vmem:[#allocation8 + $0x1a0] sm:$0xff] %v783_v12 }
  0xd6   :  { %v736_v18 = vmax.f32 %v672_v15, 0.0  ;;  %v752_v19 = vmax.f32 %v688_v17, 0.0 }
  0xd7   :  { %v387_v20 = vpop.f32.mrf.mxu2  ;;  %v435_v21 = vpop.f32.mrf.mxu3 }
  0xd8   :  { %800 = vst [vmem:[#allocation8 + $0x28] sm:$0xff] %v736_v18  ;;  %v704_v22 = vadd.f32 %v1051_v16, %v387_v20  ;;  %v720_v23 = vadd.f32 %v1051_v16, %v435_v21 }
  0xd9   :  { %816 = vst [vmem:[#allocation8 + $0xa8] sm:$0xff] %v752_v19 }
  0xda   :  { %v768_v24 = vmax.f32 %v704_v22, 0.0  ;;  %v784_v25 = vmax.f32 %v720_v23, 0.0 }
  0xdb   :  { %v294_v26 = vpop.f32.mrf.mxu0  ;;  %v342_v27 = vpop.f32.mrf.mxu1 }
  0xdc   :  { %832 = vst [vmem:[#allocation8 + $0x128] sm:$0xff] %v768_v24  ;;  %v673_v28 = vadd.f32 %v1051_v16, %v294_v26  ;;  %v689_v29 = vadd.f32 %v1051_v16, %v342_v27 }
  0xdd   :  { %848 = vst [vmem:[#allocation8 + $0x1a8] sm:$0xff] %v784_v25 }
  0xde   :  { %v737_v30 = vmax.f32 %v673_v28, 0.0  ;;  %v753_v31 = vmax.f32 %v689_v29, 0.0 }
  0xdf   :  { %v390_v32 = vpop.f32.mrf.mxu2  ;;  %v438_v33 = vpop.f32.mrf.mxu3 }
  0xe0   :  { %801 = vst [vmem:[#allocation8 + $0x30] sm:$0xff] %v737_v30  ;;  %v705_v34 = vadd.f32 %v1051_v16, %v390_v32  ;;  %v721_v35 = vadd.f32 %v1051_v16, %v438_v33 }
  0xe1   :  { %817 = vst [vmem:[#allocation8 + $0xb0] sm:$0xff] %v753_v31 }
  0xe2   :  { %v769_v36 = vmax.f32 %v705_v34, 0.0  ;;  %v785_v37 = vmax.f32 %v721_v35, 0.0 }
  0xe3   :  { %v297_v38 = vpop.f32.mrf.mxu0  ;;  %v345_v39 = vpop.f32.mrf.mxu1 }
  0xe4   :  { %833 = vst [vmem:[#allocation8 + $0x130] sm:$0xff] %v769_v36  ;;  %v674_v40 = vadd.f32 %v1051_v16, %v297_v38  ;;  %v690_v41 = vadd.f32 %v1051_v16, %v345_v39 }
  0xe5   :  { %849 = vst [vmem:[#allocation8 + $0x1b0] sm:$0xff] %v785_v37 }
  0xe6   :  { %v738_v42 = vmax.f32 %v674_v40, 0.0  ;;  %v754_v43 = vmax.f32 %v690_v41, 0.0 }
  0xe7   :  { %v393_v44 = vpop.f32.mrf.mxu2  ;;  %v441_v45 = vpop.f32.mrf.mxu3 }
  0xe8   :  { %802 = vst [vmem:[#allocation8 + $0x38] sm:$0xff] %v738_v42  ;;  %v706_v46 = vadd.f32 %v1051_v16, %v393_v44  ;;  %v722_v47 = vadd.f32 %v1051_v16, %v441_v45 }
  0xe9   :  { %818 = vst [vmem:[#allocation8 + $0xb8] sm:$0xff] %v754_v43 }
  0xea   :  { %v770_v48 = vmax.f32 %v706_v46, 0.0  ;;  %v786_v49 = vmax.f32 %v722_v47, 0.0 }
  0xeb   :  { %v300_v50 = vpop.f32.mrf.mxu0  ;;  %v348_v51 = vpop.f32.mrf.mxu1 }
  0xec   :  { %834 = vst [vmem:[#allocation8 + $0x138] sm:$0xff] %v770_v48  ;;  %v675_v52 = vadd.f32 %v1051_v16, %v300_v50  ;;  %v691_v53 = vadd.f32 %v1051_v16, %v348_v51 }
  0xed   :  { %850 = vst [vmem:[#allocation8 + $0x1b8] sm:$0xff] %v786_v49 }
  0xee   :  { %v739_v54 = vmax.f32 %v675_v52, 0.0  ;;  %v755_v55 = vmax.f32 %v691_v53, 0.0 }
  0xef   :  { %v396_v56 = vpop.f32.mrf.mxu2  ;;  %v444_v57 = vpop.f32.mrf.mxu3 }
  0xf0   :  { %803 = vst [vmem:[#allocation8 + $0x40] sm:$0xff] %v739_v54  ;;  %v707_v58 = vadd.f32 %v1051_v16, %v396_v56  ;;  %v723_v59 = vadd.f32 %v1051_v16, %v444_v57 }
  0xf1   :  { %819 = vst [vmem:[#allocation8 + $0xc0] sm:$0xff] %v755_v55 }
  0xf2   :  { %v771_v60 = vmax.f32 %v707_v58, 0.0  ;;  %v787_v61 = vmax.f32 %v723_v59, 0.0 }
  0xf3   :  { %v303_v62 = vpop.f32.mrf.mxu0  ;;  %v351_v63 = vpop.f32.mrf.mxu1 }
  0xf4   :  { %835 = vst [vmem:[#allocation8 + $0x140] sm:$0xff] %v771_v60  ;;  %v676_v0 = vadd.f32 %v1051_v16, %v303_v62  ;;  %v692_v1 = vadd.f32 %v1051_v16, %v351_v63 }
  0xf5   :  { %851 = vst [vmem:[#allocation8 + $0x1c0] sm:$0xff] %v787_v61 }
  0xf6   :  { %v740_v2 = vmax.f32 %v676_v0, 0.0  ;;  %v756_v3 = vmax.f32 %v692_v1, 0.0 }
  0xf7   :  { %v399_v4 = vpop.f32.mrf.mxu2  ;;  %v447_v5 = vpop.f32.mrf.mxu3 }
  0xf8   :  { %804 = vst [vmem:[#allocation8 + $0x48] sm:$0xff] %v740_v2  ;;  %v708_v6 = vadd.f32 %v1051_v16, %v399_v4  ;;  %v724_v7 = vadd.f32 %v1051_v16, %v447_v5 }
  0xf9   :  { %820 = vst [vmem:[#allocation8 + $0xc8] sm:$0xff] %v756_v3 }
  0xfa   :  { %v772_v8 = vmax.f32 %v708_v6, 0.0  ;;  %v788_v9 = vmax.f32 %v724_v7, 0.0 }
  0xfb   :  { %v306_v10 = vpop.f32.mrf.mxu0  ;;  %v354_v11 = vpop.f32.mrf.mxu1 }
  0xfc   :  { %836 = vst [vmem:[#allocation8 + $0x148] sm:$0xff] %v772_v8  ;;  %v677_v12 = vadd.f32 %v1051_v16, %v306_v10  ;;  %v693_v13 = vadd.f32 %v1051_v16, %v354_v11 }
  0xfd   :  { %852 = vst [vmem:[#allocation8 + $0x1c8] sm:$0xff] %v788_v9 }
  0xfe   :  { %v741_v14 = vmax.f32 %v677_v12, 0.0  ;;  %v757_v15 = vmax.f32 %v693_v13, 0.0 }
  0xff   :  { %v402_v17 = vpop.f32.mrf.mxu2  ;;  %v450_v18 = vpop.f32.mrf.mxu3 }
 0x100   :  { %805 = vst [vmem:[#allocation8 + $0x50] sm:$0xff] %v741_v14  ;;  %v709_v19 = vadd.f32 %v1051_v16, %v402_v17  ;;  %v725_v20 = vadd.f32 %v1051_v16, %v450_v18 }
 0x101   :  { %821 = vst [vmem:[#allocation8 + $0xd0] sm:$0xff] %v757_v15 }
 0x102   :  { %v773_v21 = vmax.f32 %v709_v19, 0.0  ;;  %v789_v22 = vmax.f32 %v725_v20, 0.0 }
 0x103   :  { %v309_v23 = vpop.f32.mrf.mxu0  ;;  %v357_v24 = vpop.f32.mrf.mxu1 }
 0x104   :  { %837 = vst [vmem:[#allocation8 + $0x150] sm:$0xff] %v773_v21  ;;  %v678_v25 = vadd.f32 %v1051_v16, %v309_v23  ;;  %v694_v26 = vadd.f32 %v1051_v16, %v357_v24 }
 0x105   :  { %853 = vst [vmem:[#allocation8 + $0x1d0] sm:$0xff] %v789_v22 }
 0x106   :  { %v742_v27 = vmax.f32 %v678_v25, 0.0  ;;  %v758_v28 = vmax.f32 %v694_v26, 0.0 }
 0x107   :  { %v405_v29 = vpop.f32.mrf.mxu2  ;;  %v453_v30 = vpop.f32.mrf.mxu3 }
 0x108   :  { %806 = vst [vmem:[#allocation8 + $0x58] sm:$0xff] %v742_v27  ;;  %v710_v31 = vadd.f32 %v1051_v16, %v405_v29  ;;  %v726_v32 = vadd.f32 %v1051_v16, %v453_v30 }
 0x109   :  { %822 = vst [vmem:[#allocation8 + $0xd8] sm:$0xff] %v758_v28 }
 0x10a   :  { %v774_v33 = vmax.f32 %v710_v31, 0.0  ;;  %v790_v34 = vmax.f32 %v726_v32, 0.0 }
 0x10b   :  { %v312_v35 = vpop.f32.mrf.mxu0  ;;  %v360_v36 = vpop.f32.mrf.mxu1 }
 0x10c   :  { %838 = vst [vmem:[#allocation8 + $0x158] sm:$0xff] %v774_v33  ;;  %v679_v37 = vadd.f32 %v1051_v16, %v312_v35  ;;  %v695_v38 = vadd.f32 %v1051_v16, %v360_v36 }
 0x10d   :  { %854 = vst [vmem:[#allocation8 + $0x1d8] sm:$0xff] %v790_v34 }
 0x10e   :  { %v743_v39 = vmax.f32 %v679_v37, 0.0  ;;  %v759_v40 = vmax.f32 %v695_v38, 0.0 }
 0x10f   :  { %v408_v41 = vpop.f32.mrf.mxu2  ;;  %v456_v42 = vpop.f32.mrf.mxu3 }
 0x110   :  { %807 = vst [vmem:[#allocation8 + $0x60] sm:$0xff] %v743_v39  ;;  %v711_v43 = vadd.f32 %v1051_v16, %v408_v41  ;;  %v727_v44 = vadd.f32 %v1051_v16, %v456_v42 }
 0x111   :  { %823 = vst [vmem:[#allocation8 + $0xe0] sm:$0xff] %v759_v40 }
 0x112   :  { %v775_v45 = vmax.f32 %v711_v43, 0.0  ;;  %v791_v46 = vmax.f32 %v727_v44, 0.0 }
 0x113   :  { %v315_v47 = vpop.f32.mrf.mxu0  ;;  %v363_v48 = vpop.f32.mrf.mxu1 }
 0x114   :  { %839 = vst [vmem:[#allocation8 + $0x160] sm:$0xff] %v775_v45  ;;  %v680_v49 = vadd.f32 %v1051_v16, %v315_v47  ;;  %v696_v50 = vadd.f32 %v1051_v16, %v363_v48 }
 0x115   :  { %855 = vst [vmem:[#allocation8 + $0x1e0] sm:$0xff] %v791_v46 }
 0x116   :  { %v744_v51 = vmax.f32 %v680_v49, 0.0  ;;  %v760_v52 = vmax.f32 %v696_v50, 0.0 }
 0x117   :  { %v411_v53 = vpop.f32.mrf.mxu2  ;;  %v459_v54 = vpop.f32.mrf.mxu3 }
 0x118   :  { %808 = vst [vmem:[#allocation8 + $0x68] sm:$0xff] %v744_v51  ;;  %v712_v55 = vadd.f32 %v1051_v16, %v411_v53  ;;  %v728_v56 = vadd.f32 %v1051_v16, %v459_v54 }
 0x119   :  { %824 = vst [vmem:[#allocation8 + $0xe8] sm:$0xff] %v760_v52 }
 0x11a   :  { %v776_v57 = vmax.f32 %v712_v55, 0.0  ;;  %v792_v58 = vmax.f32 %v728_v56, 0.0 }
 0x11b   :  { %v318_v59 = vpop.f32.mrf.mxu0  ;;  %v366_v60 = vpop.f32.mrf.mxu1 }
 0x11c   :  { %840 = vst [vmem:[#allocation8 + $0x168] sm:$0xff] %v776_v57  ;;  %v681_v61 = vadd.f32 %v1051_v16, %v318_v59  ;;  %v697_v62 = vadd.f32 %v1051_v16, %v366_v60 }
 0x11d   :  { %856 = vst [vmem:[#allocation8 + $0x1e8] sm:$0xff] %v792_v58 }
 0x11e   :  { %v745_v63 = vmax.f32 %v681_v61, 0.0  ;;  %v761_v0 = vmax.f32 %v697_v62, 0.0 }
 0x11f   :  { %v414_v1 = vpop.f32.mrf.mxu2  ;;  %v462_v2 = vpop.f32.mrf.mxu3 }
 0x120   :  { %809 = vst [vmem:[#allocation8 + $0x70] sm:$0xff] %v745_v63  ;;  %v713_v3 = vadd.f32 %v1051_v16, %v414_v1  ;;  %v729_v4 = vadd.f32 %v1051_v16, %v462_v2 }
 0x121   :  { %825 = vst [vmem:[#allocation8 + $0xf0] sm:$0xff] %v761_v0 }
 0x122   :  { %v777_v5 = vmax.f32 %v713_v3, 0.0  ;;  %v793_v6 = vmax.f32 %v729_v4, 0.0 }
 0x123   :  { %v321_v7 = vpop.f32.mrf.mxu0  ;;  %v369_v8 = vpop.f32.mrf.mxu1 }
 0x124   :  { %841 = vst [vmem:[#allocation8 + $0x170] sm:$0xff] %v777_v5  ;;  %v682_v9 = vadd.f32 %v1051_v16, %v321_v7  ;;  %v698_v10 = vadd.f32 %v1051_v16, %v369_v8 }
 0x125   :  { %857 = vst [vmem:[#allocation8 + $0x1f0] sm:$0xff] %v793_v6 }
 0x126   :  { %v746_v11 = vmax.f32 %v682_v9, 0.0  ;;  %v762_v12 = vmax.f32 %v698_v10, 0.0 }
 0x127   :  { %v417_v13 = vpop.f32.mrf.mxu2  ;;  %v465_v14 = vpop.f32.mrf.mxu3 }
 0x128   :  { %810 = vst [vmem:[#allocation8 + $0x78] sm:$0xff] %v746_v11  ;;  %v714_v15 = vadd.f32 %v1051_v16, %v417_v13  ;;  %v730_v17 = vadd.f32 %v1051_v16, %v465_v14 }
 0x129   :  { %826 = vst [vmem:[#allocation8 + $0xf8] sm:$0xff] %v762_v12 }
 0x12a   :  { %v778_v18 = vmax.f32 %v714_v15, 0.0  ;;  %v794_v19 = vmax.f32 %v730_v17, 0.0 }
 0x12c   :  { %842 = vst [vmem:[#allocation8 + $0x178] sm:$0xff] %v778_v18 }
 0x12d   :  { %858 = vst [vmem:[#allocation8 + $0x1f8] sm:$0xff] %v794_v19 }
 0x12e   :  { %871 = dma.vmem_to_hbm [thread:$0]  %s864_s24, 8192, %s866_s27, [#allocation5], %s1012_s20, %s1012_s20, %s1013_s21  }
 0x12f   :  { %1009 = dma.done.wait [#allocation5], 8192  }
 0x130   :  { %1010 = vsyncadd [#allocation5], 4294959104 }
 0x131   :  { %876 = vsyncpa [#allocation4], 1 }
 0x132   :  { %877 = vsyncpa [#allocation7], 1 }
 0x133   :  { %878 = vsyncpa [#allocation5], 1 }

</bundles_post_ra>
